<compile_context>
chip_gen: v6e
topology: v6e:2x2x1
jax: 0.10.0
libtpu: 0.0.40
codegen_flags: <defaults>
</compile_context>

<pallas_src>
import jax
import jax.numpy as jnp
from jax.experimental import pallas as pl
from jax.experimental.pallas import tpu as pltpu


def _round_up(n: int, m: int) -> int:
    return (n + m - 1) // m * m


def al_forward_kernel(x_ref, y_ref, wf_ref, wg_ref, wdy_ref, out_ref):
    H = wf_ref.shape[1]
    Dy = wdy_ref.shape[1]

    # Cast to bf16 right before the MXU; accumulate in f32.
    x = x_ref[...].astype(jnp.bfloat16)
    y = y_ref[...].astype(jnp.bfloat16)
    wf = wf_ref[...].astype(jnp.bfloat16)
    wg = wg_ref[...].astype(jnp.bfloat16)
    wdy = wdy_ref[...].astype(jnp.bfloat16)

    s = jnp.dot(x, wf, preferred_element_type=jnp.float32)      # [m, H]
    t = jnp.dot(y, wg, preferred_element_type=jnp.float32)      # [m, H]
    tp = jnp.dot(t.astype(jnp.bfloat16), wdy,
                 preferred_element_type=jnp.float32)             # [m, Dy]

    # Lane-dense fused output slab: [ s | t | t' ], all slices 128-lane aligned.
    out_ref[:, :H] = s.astype(out_ref.dtype)
    out_ref[:, H:2 * H] = t.astype(out_ref.dtype)
    out_ref[:, 2 * H:] = tp.astype(out_ref.dtype)


def al_component_forward(x, y, wf, wg, wdy, *, block_m=None):
    """Training-mode forward of ALComponent.

    x: [B, Dx], y: [B, Dy]; weights pre-transposed to [in, out]:
    wf: [Dx, H], wg: [Dy, H], wdy: [H, Dy].
    Returns (s, t, t_prime); the torch module returns (s.detach(), t.detach())
    and keeps t_prime as internal state (detach is a no-op on forward values).
    """
    B, Dx = x.shape
    By, Dy = y.shape
    assert By == B
    H = wf.shape[1]
    assert wg.shape == (Dy, H) and wdy.shape == (H, Dy)
    N_out = 2 * H + Dy

    if block_m is None:
        # Two balanced grid steps (v7x: one per TensorCore); cap for large B.
        block_m = min(_round_up(pl.cdiv(B, 2), 8), 1024)
    block_m = max(8, min(block_m, _round_up(B, 8)))
    grid = (pl.cdiv(B, block_m),)

    flops = 2 * B * (Dx * H + Dy * H + H * Dy)
    bytes_accessed = int(
        4 * (B * Dx + B * Dy + Dx * H + Dy * H + H * Dy)   # f32 reads
        + 4 * B * N_out)                                   # f32 fused output

    out = pl.pallas_call(
        al_forward_kernel,
        out_shape=jax.ShapeDtypeStruct((B, N_out), jnp.float32),
        grid=grid,
        in_specs=[
            pl.BlockSpec((block_m, Dx), lambda b: (b, 0)),   # x: pipelined
            pl.BlockSpec((block_m, Dy), lambda b: (b, 0)),   # y: pipelined
            pl.BlockSpec((Dx, H), lambda b: (0, 0)),         # Wf: resident
            pl.BlockSpec((Dy, H), lambda b: (0, 0)),         # Wg: resident
            pl.BlockSpec((H, Dy), lambda b: (0, 0)),         # Wdy: resident
        ],
        out_specs=pl.BlockSpec((block_m, N_out), lambda b: (b, 0)),
        compiler_params=pltpu.CompilerParams(
            dimension_semantics=("parallel",)),
        cost_estimate=pl.CostEstimate(
            flops=flops, transcendentals=0, bytes_accessed=bytes_accessed),
    )(x, y, wf, wg, wdy)

    s = out[:, :H]
    t = out[:, H:2 * H]
    t_prime = out[:, 2 * H:]
    return s, t, t_prime


if __name__ == "__main__":
    # Shapes consistent with CONFIG: embedding_dim=(300,128), hidden=128.
    # B=200 exercises the two-step batch grid and the ragged last block.
    B, Dx, Dy, H = 200, 300, 128, 128

    key = jax.random.PRNGKey(0)
    kx, ky, kf, kg, kd = jax.random.split(key, 5)

    x = jax.random.normal(kx, (B, Dx), dtype=jnp.float32)
    y = jax.random.normal(ky, (B, Dy), dtype=jnp.float32)

    # Deterministic params (roughly PyTorch Linear scale), stored [in, out].
    wf = jax.random.uniform(kf, (Dx, H), jnp.float32, -1.0, 1.0) / jnp.sqrt(Dx)
    wg = jax.random.uniform(kg, (Dy, H), jnp.float32, -1.0, 1.0) / jnp.sqrt(Dy)
    wdy = jax.random.uniform(kd, (H, Dy), jnp.float32, -1.0, 1.0) / jnp.sqrt(H)

    s, t, t_prime = al_component_forward(x, y, wf, wg, wdy)
    jax.block_until_ready((s, t, t_prime))

    # bf16-consistent reference computed in f32 (same rounding of operands as
    # the kernel, f32 accumulation).
    f32 = jnp.float32
    hp = jax.lax.Precision.HIGHEST
    xb = x.astype(jnp.bfloat16).astype(f32)
    yb = y.astype(jnp.bfloat16).astype(f32)
    wfb = wf.astype(jnp.bfloat16).astype(f32)
    wgb = wg.astype(jnp.bfloat16).astype(f32)
    wdyb = wdy.astype(jnp.bfloat16).astype(f32)

    s_ref = jnp.dot(xb, wfb, precision=hp)
    t_ref = jnp.dot(yb, wgb, precision=hp)
    tp_ref = jnp.dot(t_ref.astype(jnp.bfloat16).astype(f32), wdyb, precision=hp)

    assert jnp.allclose(s, s_ref, atol=1e-2, rtol=1e-2)
    assert jnp.allclose(t, t_ref, atol=1e-2, rtol=1e-2)
    assert jnp.allclose(t_prime, tp_ref, atol=2e-2, rtol=2e-2)

    # TODO(synk): eval-mode branch (returns cached _t_prime), dropout module,
    # and loss() (bx / criterion_br / criterion_ae) are host-side module state
    # / loss logic, not part of this forward kernel.
    print("KERNEL_OK")
</pallas_src>

<mosaic_0001>
module attributes {stable_mosaic.version = 11 : i64} {
  func.func @al_forward_kernel(%arg0: i32, %arg1: memref<104x300xf32, #tpu.memory_space<vmem>>, %arg2: memref<104x128xf32, #tpu.memory_space<vmem>>, %arg3: memref<300x128xf32, #tpu.memory_space<vmem>>, %arg4: memref<128x128xf32, #tpu.memory_space<vmem>>, %arg5: memref<128x128xf32, #tpu.memory_space<vmem>>, %arg6: memref<104x384xf32, #tpu.memory_space<vmem>>) attributes {dimension_semantics = [#tpu.dimension_semantics<parallel>], iteration_bounds = array<i64: 2>, scalar_prefetch = 0 : i64, scratch_operands = 0 : i64, tpu.core_type = #tpu.core_type<tc>, window_params = [{transform_indices = @transform_0, window_bounds = array<i64: 104, 300>}, {transform_indices = @transform_1, window_bounds = array<i64: 104, 128>}, {pipeline_mode = #tpu.pipeline_mode<synchronous>, transform_indices = @transform_2, window_bounds = array<i64: 300, 128>}, {pipeline_mode = #tpu.pipeline_mode<synchronous>, transform_indices = @transform_3, window_bounds = array<i64: 128, 128>}, {pipeline_mode = #tpu.pipeline_mode<synchronous>, transform_indices = @transform_4, window_bounds = array<i64: 128, 128>}, {transform_indices = @transform_5, window_bounds = array<i64: 104, 384>}]} {
    %c0 = arith.constant 0 : index
    %c0_0 = arith.constant 0 : index
    %0 = vector.load %arg1[%c0, %c0_0] : memref<104x300xf32, #tpu.memory_space<vmem>>, vector<104x300xf32>
    %1 = arith.truncf %0 : vector<104x300xf32> to vector<104x300xbf16>
    %c0_1 = arith.constant 0 : index
    %c0_2 = arith.constant 0 : index
    %2 = vector.load %arg2[%c0_1, %c0_2] : memref<104x128xf32, #tpu.memory_space<vmem>>, vector<104x128xf32>
    %3 = arith.truncf %2 : vector<104x128xf32> to vector<104x128xbf16>
    %c0_3 = arith.constant 0 : index
    %c0_4 = arith.constant 0 : index
    %4 = vector.load %arg3[%c0_3, %c0_4] : memref<300x128xf32, #tpu.memory_space<vmem>>, vector<300x128xf32>
    %5 = arith.truncf %4 : vector<300x128xf32> to vector<300x128xbf16>
    %c0_5 = arith.constant 0 : index
    %c0_6 = arith.constant 0 : index
    %6 = vector.load %arg4[%c0_5, %c0_6] : memref<128x128xf32, #tpu.memory_space<vmem>>, vector<128x128xf32>
    %7 = arith.truncf %6 : vector<128x128xf32> to vector<128x128xbf16>
    %c0_7 = arith.constant 0 : index
    %c0_8 = arith.constant 0 : index
    %8 = vector.load %arg5[%c0_7, %c0_8] : memref<128x128xf32, #tpu.memory_space<vmem>>, vector<128x128xf32>
    %9 = arith.truncf %8 : vector<128x128xf32> to vector<128x128xbf16>
    %cst = arith.constant dense<0.000000e+00> : vector<104x128xf32>
    %10 = tpu.matmul %1, %5, %cst {dimension_numbers = #tpu.dot_dimension_numbers<[1], [0], [0], [1], [0, 0, 1, 1], [], []>} : vector<104x300xbf16>, vector<300x128xbf16>, vector<104x128xf32> -> vector<104x128xf32>
    %cst_9 = arith.constant dense<0.000000e+00> : vector<104x128xf32>
    %11 = tpu.matmul %3, %7, %cst_9 {dimension_numbers = #tpu.dot_dimension_numbers<[1], [0], [0], [1], [0, 0, 1, 1], [], []>} : vector<104x128xbf16>, vector<128x128xbf16>, vector<104x128xf32> -> vector<104x128xf32>
    %12 = arith.truncf %11 : vector<104x128xf32> to vector<104x128xbf16>
    %cst_10 = arith.constant dense<0.000000e+00> : vector<104x128xf32>
    %13 = tpu.matmul %12, %9, %cst_10 {dimension_numbers = #tpu.dot_dimension_numbers<[1], [0], [0], [1], [0, 0, 1, 1], [], []>} : vector<104x128xbf16>, vector<128x128xbf16>, vector<104x128xf32> -> vector<104x128xf32>
    %c0_11 = arith.constant 0 : index
    %c0_12 = arith.constant 0 : index
    %14 = vector.load %arg6[%c0_11, %c0_12] : memref<104x384xf32, #tpu.memory_space<vmem>>, vector<104x128xf32>
    tpu.vector_store %arg6[%c0_11, %c0_12], %10 {strides = array<i32>} : memref<104x384xf32, #tpu.memory_space<vmem>>, vector<104x128xf32>,
    %c0_13 = arith.constant 0 : index
    %c128 = arith.constant 128 : index
    %15 = vector.load %arg6[%c0_13, %c128] : memref<104x384xf32, #tpu.memory_space<vmem>>, vector<104x128xf32>
    tpu.vector_store %arg6[%c0_13, %c128], %11 {strides = array<i32>} : memref<104x384xf32, #tpu.memory_space<vmem>>, vector<104x128xf32>,
    %c0_14 = arith.constant 0 : index
    %c256 = arith.constant 256 : index
    %16 = vector.load %arg6[%c0_14, %c256] : memref<104x384xf32, #tpu.memory_space<vmem>>, vector<104x128xf32>
    tpu.vector_store %arg6[%c0_14, %c256], %13 {strides = array<i32>} : memref<104x384xf32, #tpu.memory_space<vmem>>, vector<104x128xf32>,
    return
  }
  func.func @transform_0(%arg0: i32) -> (i32, i32) {
    %c0_i32 = arith.constant 0 : i32
    %c0_i32_0 = arith.constant 0 : i32
    return %arg0, %c0_i32 : i32, i32
  }
  func.func @transform_1(%arg0: i32) -> (i32, i32) {
    %c0_i32 = arith.constant 0 : i32
    %c0_i32_0 = arith.constant 0 : i32
    return %arg0, %c0_i32 : i32, i32
  }
  func.func @transform_2(%arg0: i32) -> (i32, i32) {
    %c0_i32 = arith.constant 0 : i32
    %c0_i32_0 = arith.constant 0 : i32
    %c0_i32_1 = arith.constant 0 : i32
    return %c0_i32, %c0_i32_0 : i32, i32
  }
  func.func @transform_3(%arg0: i32) -> (i32, i32) {
    %c0_i32 = arith.constant 0 : i32
    %c0_i32_0 = arith.constant 0 : i32
    %c0_i32_1 = arith.constant 0 : i32
    return %c0_i32, %c0_i32_0 : i32, i32
  }
  func.func @transform_4(%arg0: i32) -> (i32, i32) {
    %c0_i32 = arith.constant 0 : i32
    %c0_i32_0 = arith.constant 0 : i32
    %c0_i32_1 = arith.constant 0 : i32
    return %c0_i32, %c0_i32_0 : i32, i32
  }
  func.func @transform_5(%arg0: i32) -> (i32, i32) {
    %c0_i32 = arith.constant 0 : i32
    %c0_i32_0 = arith.constant 0 : i32
    return %arg0, %c0_i32 : i32, i32
  }
}

</mosaic_0001>

<bundles_post_ra>
// kernel: tpu_custom_call.1
= control target key start
LH: loop header
LB: loop body
LE: loop exit
PB: predicated region body
PF: predicated region fallthrough
CT: control target
= control target key end

     0   :  { %s2179_s0 = inlined_call_operand.hbm [shape: f32[200,300], index: 0, kind: input, shape index: {}]   ;;  %s2180_s1 = inlined_call_operand.hbm [shape: f32[200,128], index: 1, kind: input, shape index: {}]   ;;  %s2181_s2 = inlined_call_operand.hbm [shape: f32[300,128], index: 2, kind: input, shape index: {}]   ;;  %s2182_s3 = inlined_call_operand.hbm [shape: f32[128,128], index: 3, kind: input, shape index: {}]   ;;  %s2183_s4 = inlined_call_operand.hbm [shape: f32[128,128], index: 4, kind: input, shape index: {}]   ;;  %s2184_s5 = inlined_call_operand.hbm [shape: f32[200,384], index: 5, kind: output, shape index: {}]  }
   0x1   :  { %2188 = sst [smem:[#allocation17_spill]] %s2179_s0 }
   0x2   :  { %10 = vsyncpa [#allocation3], 0 }
   0x3   :  { %12 = vsyncpa [#allocation3 + $0x1], 0 }
   0x4   :  { %13 = vsyncpa [#allocation6], 0 }
   0x5   :  { %15 = vsyncpa [#allocation6 + $0x1], 0 }
   0x6   :  { %16 = vsyncpa [#allocation9], 0 }
   0x7   :  { %17 = vsyncpa [#allocation4], 0 }
   0x8   :  { %19 = vsyncpa [#allocation4 + $0x1], 0  ;;  %s1727_s18 = smov 0   ;;  %s1729_s19 = smov 0  }
   0x9   :  { %s1731_s20 = smov 0   ;;  %s1733_s21 = smov 0  }
   0xa LB: > { %s1748_s22 = sadd.s32 4294967295, %s1679_s21   ;;  %s1113_s23 = sadd.s32 4294967294, %s1679_s21   ;;  %s1679_s21 = sphi %s1733_s21, %s2207_s21   ;;  %s1675_s20 = sphi %s1731_s20, %s2206_s20   ;;  %s1671_s19 = sphi %s1729_s19, %s2205_s19   ;;  %s1667_s18 = sphi %s1727_s18, %s2204_s18  }
   0xb   : > { %s1752_s24 = sadd.s32 1, %s1679_s21   ;;  %s32_s25 = sadd.s32 1, %s1675_s20 }
   0xc   : > { %s29_s26 = ssub.s32 %s1679_s21, %s1752_s24  ;;  %p39_p0 = scmp.ne.s32.totalorder %s1675_s20, %s1671_s19 }
   0xd   : > { %p30_p1 = scmp.eq.s32.totalorder %s29_s26, 0  ;;  %p40_p2 = scmp.eq.s32.totalorder %s1679_s21, 0 }
   0xe   : > { %p45_p3 = scmp.ne.s32.totalorder %s1671_s19, %s1667_s18  ;;  %p2185_p4 = scmp.eq.s32.totalorder %s1748_s22, 0 }
   0xf   : > { %s1764_s27 = scalar_select %p30_p1, %s1675_s20, %s32_s25  }
  0x10   : > { %p1766_p5 = por %p40_p2, %p39_p0  ;;  %p1772_p6 = por %p2185_p4, %p45_p3 }
  0x11   : > { %p158_p7 = scmp.eq.s32.totalorder %s1748_s22, 1  ;;  %p164_p8 = scmp.eq.s32.totalorder %s1113_s23, 1 }
  0x12   : > { %s2190_s29 = scalar_select %p1772_p6, 1, 0 }
  0x13   : > { %p1114_p9 = scmp.ge.s32.totalorder %s1679_s21, 1  ;;  %p171_p10 = scmp.lt.s32.totalorder %s1679_s21, 3 }
  0x14   : > { %p1779_p11 = por %p158_p7, %p39_p0  ;;  %p1783_p12 = por %p164_p8, %p45_p3 }
  0x15   : > { %p1787_p13 = pnand %p1114_p9, %p171_p10  ;;  %s1681_s8 = smov [#allocation8]  }
  0x16   : > { %s2191_s30 = scalar_select %p1779_p11, 1, 0 }
  0x17   : > { %s2192_s6 = scalar_select %p1783_p12, 1, 0 }
  0x18   : > { %p1405_p1 = pneg %p1787_p13  ;;  %s196_s9 = sshll.u32 %s1681_s8, 4  ;;  %s197_s9 = int_to_ptr.vmem [resolvable:$true] %s196_s9 }
  0x19   : > { %s1682_s11 = smov [#allocation7]   ;;  %s1484_s13 = scalar_lea.vmem %s197_s9, 2048 }
  0x1a   : > { %p1795_p2 = pnand %p1405_p1, %p2185_p4  ;;  %s183_s12 = sshll.u32 %s1682_s11, 4  ;;  %s184_s12 = int_to_ptr.vmem [resolvable:$true] %s183_s12 }
  0x1b   : > { %p1485_p3 = scmp.ne.s32.totalorder %s197_s9, %s1484_s13  ;;  %p1492_p9 = scmp.lt.s32.totalorder %s197_s9, %s197_s9 }
  0x1c   : > { %p1475_p0 = pneg %p1795_p2  ;;  %p1493_p10 = scmp.lt.s32.totalorder %s1484_s13, %s1484_s13 }
  0x1e   : > { %p1487_p7 = pnand %p1485_p3, %p1475_p0  ;;  %p1494_p1 = por %p1493_p10, %p1492_p9 }
  0x20   : > { %p1488_p8 = pneg %p1487_p7 }
  0x22   : > { %p1495_p4 = pnand %p1494_p1, %p1488_p8 }
  0x24   : > { %1498 = shalt.err (!%p1495_p4)
}
  0x25   : > { %s1683_s14 = smov 128   ;;  %s1684_s15 = smov 8  }
  0x26   : > { %1411 = dma.hbm_to_vmem [thread:$0]  (!%p1795_p2), %s2182_s3, 2048, %s197_s9, [#allocation9], %s1683_s14, %s1683_s14, %s1684_s15  }
  0x27   : > { %s1510_s23 = scalar_lea.vmem %s184_s12, 4864  ;;  %p1518_p11 = scmp.lt.s32.totalorder %s184_s12, %s184_s12 }
  0x28   : > { %p1511_p12 = scmp.ne.s32.totalorder %s184_s12, %s1510_s23  ;;  %p1519_p6 = scmp.lt.s32.totalorder %s1510_s23, %s1510_s23 }
  0x2a   : > { %p1513_p3 = pnand %p1511_p12, %p1475_p0  ;;  %p1520_p9 = por %p1519_p6, %p1518_p11 }
  0x2c   : > { %p1514_p7 = pneg %p1513_p3 }
  0x2e   : > { %p1521_p8 = pnand %p1520_p9, %p1514_p7 }
  0x30   : > { %1524 = shalt.err (!%p1521_p8)
}
  0x31   : > { %1408 = dma.hbm_to_vmem [thread:$0]  (!%p1795_p2), %s2181_s2, 4864, %s184_s12, [#allocation6], %s1683_s14, %s1683_s14, %s1684_s15  }
  0x32   : > { %s1685_s8 = smov [#allocation10]  }
  0x33   : > { %s209_s9 = sshll.u32 %s1685_s8, 4  ;;  %s210_s9 = int_to_ptr.vmem [resolvable:$true] %s209_s9 }
  0x34   : > { %s1536_s11 = scalar_lea.vmem %s210_s9, 2048  ;;  %p1544_p1 = scmp.lt.s32.totalorder %s210_s9, %s210_s9 }
  0x35   : > { %p1537_p4 = scmp.ne.s32.totalorder %s210_s9, %s1536_s11  ;;  %p1545_p6 = scmp.lt.s32.totalorder %s1536_s11, %s1536_s11 }
  0x37   : > { %p1539_p12 = pnand %p1537_p4, %p1475_p0  ;;  %p1546_p11 = por %p1545_p6, %p1544_p1 }
  0x39   : > { %p1540_p10 = pneg %p1539_p12 }
  0x3b   : > { %p1547_p3 = pnand %p1546_p11, %p1540_p10 }
  0x3d   : > { %1550 = shalt.err (!%p1547_p3)
}
  0x3e   : > { %1414 = dma.hbm_to_vmem [thread:$0]  (!%p1795_p2), %s2183_s4, 2048, %s210_s9, [#allocation9], %s1683_s14, %s1683_s14, %s1684_s15  }
  0x3f   : > { %p2187_p7 = scmp.ge.s32.totalorder %s1679_s21, 2 }
  0x41   : > { %219 = sbr.rel (%p2187_p7) target bundleno = 144 (0x90), region = 28 }
  0x46   : > { %222 = sbr.rel (!%p1766_p5) target bundleno = 110 (0x6e), region = 32  ;;  %s223_s12 = sand.u32 (%p1766_p5), 1, %s1675_s20  }
  0x47   : > { %s228_s17 = smul.u32 (%p1766_p5), 13, %s1679_s21  ;;  %s1835_s15 = scalar_lea.sflag (%p1766_p5), [#allocation3], %s223_s12 }
  0x48   : > { %s1384_s23 = smul.u32 (%p1766_p5), 312, %s223_s12 }
  0x49   : > { %s229_s25 = ssub.s32 (%p1766_p5), 25, %s228_s17 }
  0x4a   : > { %p230_p0 = scmp.lt.s32.totalorder (%p1766_p5), %s229_s25, 13  ;;  %s227_s26 = scalar_lea.vmem (%p1766_p5), [#allocation2], %s1384_s23 }
  0x4c   : > { %s2209_s25 = smov (!%p230_p0, %s229_s25), 13 }
  0x4d   : > { %s1832_s10 = smul.u32 384, %s2209_s25 }
  0x4f   : > { %s235_s14 = ssub.s32 4992, %s1832_s10 }
  0x50   : > { %236 = vsyncadd %s1835_s15, %s235_s14  ;;  %p1121_p2 = scmp.ne.s32.totalorder %s1832_s10, 0  ;;  %s1422_s8 = smul.u32 4992, %s1679_s21 }
  0x51   : > { %s242_s9 = sshll.u32 %s227_s26, 4  ;;  %s2195_s0 = sld [smem:[#allocation17_spill]]  ;;  %s1845_s9 = int_to_ptr.vmem [resolvable:$true] %s242_s9 }
  0x57   : > { %s1843_s16 = scalar_lea.hbm %s2195_s0, %s1422_s8  ;;  %s1555_s25 = scalar_lea.hbm %s2195_s0, 9600 }
  0x58   : > { %s1551_s12 = scalar_lea.hbm %s1843_s16, %s1832_s10  ;;  %p1556_p12 = scmp.lt.s32.totalorder %s1843_s16, %s2195_s0 }
  0x59   : > { %p1552_p9 = scmp.ne.s32.totalorder %s1843_s16, %s1551_s12  ;;  %p1557_p10 = scmp.lt.s32.totalorder %s1555_s25, %s1551_s12 }
  0x5b   : > { %p1553_p8 = pnand %p1552_p9, %p1121_p2  ;;  %p1558_p1 = por %p1557_p10, %p1556_p12 }
  0x5d   : > { %p1554_p4 = pneg %p1553_p8 }
  0x5f   : > { %p1559_p6 = pnand %p1558_p1, %p1554_p4 }
  0x61   : > { %1562 = shalt.err (!%p1559_p6)
}
  0x62   : > { %s1563_s8 = scalar_lea.vmem %s1845_s9, %s1832_s10  ;;  %s1686_s11 = smov [#allocation2]  }
  0x63   : > { %p1564_p11 = scmp.ne.s32.totalorder %s1845_s9, %s1563_s8  ;;  %s1567_s13 = sshll.u32 %s1686_s11, 4  ;;  %s1568_s13 = int_to_ptr.vmem [resolvable:$false] %s1567_s13 }
  0x64   : > { %s1569_s17 = scalar_lea.vmem %s1568_s13, 9984  ;;  %p1570_p9 = scmp.lt.s32.totalorder %s1845_s9, %s1568_s13 }
  0x65   : > { %p1565_p3 = pnand %p1564_p11, %p1121_p2  ;;  %p1571_p8 = scmp.lt.s32.totalorder %s1569_s17, %s1563_s8 }
  0x67   : > { %p1566_p0 = pneg %p1565_p3  ;;  %p1572_p7 = por %p1571_p8, %p1570_p9 }
  0x69   : > { %p1573_p12 = pnand %p1572_p7, %p1566_p0 }
  0x6b   : > { %1576 = shalt.err (!%p1573_p12)
}
  0x6c   : > { %s1687_s12 = smov 384   ;;  %s1688_s23 = smov 24  }
  0x6d   : > { %248 = dma.hbm_to_vmem [thread:$0]  (%p1121_p2), %s1843_s16, %s1832_s10, %s1845_s9, %s1835_s15, %s1687_s12, %s1687_s12, %s1688_s23  }
  0x6e PF: > { %251 = sbr.rel (!%p1766_p5) target bundleno = 144 (0x90), region = 36  ;;  %s252_s25 = sand.u32 (%p1766_p5), 1, %s1679_s21  }
  0x6f   : > { %s254_s14 = sand.u32 (%p1766_p5), 1, %s1675_s20   ;;  %s257_s8 = smul.u32 (%p1766_p5), 13, %s1679_s21 }
  0x70   : > { %s1386_s26 = smul.u32 (%p1766_p5), 104, %s254_s14  ;;  %s1879_s0 = scalar_lea.sflag (%p1766_p5), [#allocation6], %s252_s25 }
  0x71   : > { %s258_s11 = ssub.s32 (%p1766_p5), 25, %s257_s8 }
  0x72   : > { %p259_p7 = scmp.lt.s32.totalorder (%p1766_p5), %s258_s11, 13  ;;  %s256_s10 = scalar_lea.vmem (%p1766_p5), [#allocation5], %s1386_s26 }
  0x74   : > { %s2211_s11 = smov (!%p259_p7, %s258_s11), 13 }
  0x75   : > { %s1876_s13 = sshll.u32 %s2211_s11, 7 }
  0x76   : > { %s263_s17 = ssub.s32 1664, %s1876_s13 }
  0x77   : > { %264 = vsyncadd %s1879_s0, %s263_s17  ;;  %p1125_p5 = scmp.ne.s32.totalorder %s1876_s13, 0  ;;  %s1147_s28 = smul.u32 1664, %s1679_s21 }
  0x78   : > { %s269_s15 = sshll.u32 %s256_s10, 4  ;;  %s1581_s26 = scalar_lea.hbm %s2180_s1, 3200  ;;  %s1889_s15 = int_to_ptr.vmem [resolvable:$true] %s269_s15 }
  0x79   : > { %s1887_s12 = scalar_lea.hbm %s2180_s1, %s1147_s28 }
  0x7a   : > { %s1577_s23 = scalar_lea.hbm %s1887_s12, %s1876_s13  ;;  %p1582_p1 = scmp.lt.s32.totalorder %s1887_s12, %s2180_s1 }
  0x7b   : > { %p1578_p2 = scmp.ne.s32.totalorder %s1887_s12, %s1577_s23  ;;  %p1583_p6 = scmp.lt.s32.totalorder %s1581_s26, %s1577_s23 }
  0x7d   : > { %p1579_p4 = pnand %p1578_p2, %p1125_p5  ;;  %p1584_p11 = por %p1583_p6, %p1582_p1 }
  0x7f   : > { %p1580_p10 = pneg %p1579_p4 }
  0x81   : > { %p1585_p3 = pnand %p1584_p11, %p1580_p10 }
  0x83   : > { %1588 = shalt.err (!%p1585_p3)
}
  0x84   : > { %s1589_s17 = scalar_lea.vmem %s1889_s15, %s1876_s13  ;;  %s1689_s10 = smov [#allocation5]  }
  0x85   : > { %p1590_p0 = scmp.ne.s32.totalorder %s1889_s15, %s1589_s17  ;;  %s1593_s28 = sshll.u32 %s1689_s10, 4  ;;  %s1594_s28 = int_to_ptr.vmem [resolvable:$false] %s1593_s28 }
  0x86   : > { %s1595_s9 = scalar_lea.vmem %s1594_s28, 3328  ;;  %p1596_p12 = scmp.lt.s32.totalorder %s1889_s15, %s1594_s28 }
  0x87   : > { %p1591_p9 = pnand %p1590_p0, %p1125_p5  ;;  %p1597_p7 = scmp.lt.s32.totalorder %s1595_s9, %s1589_s17 }
  0x89   : > { %p1592_p8 = pneg %p1591_p9  ;;  %p1598_p2 = por %p1597_p7, %p1596_p12 }
  0x8b   : > { %p1599_p4 = pnand %p1598_p2, %p1592_p8 }
  0x8d   : > { %1602 = shalt.err (!%p1599_p4)
}
  0x8e   : > { %s1690_s16 = smov 128   ;;  %s1691_s23 = smov 8  }
  0x8f   : > { %275 = dma.hbm_to_vmem [thread:$0]  (%p1125_p5), %s1887_s12, %s1876_s13, %s1889_s15, %s1879_s0, %s1690_s16, %s1690_s16, %s1691_s23  }
  0x90 PF: > { %281 = sbr.rel (%p1787_p13) target bundleno = 704 (0x2c0), region = 40  ;;  %s1918_s25 = sand.u32 (!%p1787_p13), 1, %s1671_s19  }
  0x91   : > { %s1387_s14 = smul.u32 (!%p1787_p13), 312, %s1918_s25  ;;  %s284_s26 = scalar_lea.sflag (!%p1787_p13), [#allocation3], %s1918_s25 }
  0x92   : > { %p2196_p10 = scmp.ne.s32.totalorder (!%p1787_p13), %s2190_s29, 0 }
  0x93   : > { %s1924_s8 = scalar_lea.vmem (!%p1787_p13), [#allocation2], %s1387_s14 }
  0x95   : > { %1646 = dma.done.wait (%p2196_p10), %s284_s26, 4992  }
  0x96   : > { %1648 = vsyncadd (%p2196_p10), %s284_s26, 4294962304  ;;  %s292_s0 = sand.u32 1, %s1748_s22   ;;  %s1388_s7 = smul.u32 104, %s1918_s25 }
  0x97   : > { %s293_s13 = scalar_lea.sflag [#allocation6], %s292_s0 }
  0x98   : > { %s1932_s15 = scalar_lea.vmem [#allocation5], %s1388_s7 }
  0x99   : > { %1650 = dma.done.wait (%p2196_p10), %s293_s13, 1664  }
  0x9a   : > { %1652 = vsyncadd (%p2196_p10), %s293_s13, 4294965632  ;;  %p2197_p13 = scmp.eq.s32.totalorder %s1748_s22, 0 }
  0x9c   : > { %1654 = dma.done.wait (%p2197_p13), [#allocation6], 4864   ;;  %p2198_p5 = pmov %p2197_p13 }
  0x9e   : > { %1656 = vsyncadd (%p2198_p5), [#allocation6], 4294962432  ;;  %p2199_p1 = pmov %p2198_p5 }
  0xa0   : > { %1658 = dma.done.wait (%p2199_p1), [#allocation9], 4096   ;;  %p2200_p6 = pmov %p2199_p1 }
  0xa1   : > { %v1692_v0 = vmov 0.0   ;;  %vm1693_vm0 = vmmov 0   ;;  %v468_v1 = vld [vmem:[#allocation7 + $0xf0] sm:$0xff]  ;;  %v469_v2 = vld [vmem:[#allocation7 + $0xf8] sm:$0xff]  ;;  %v474_v6 = vld [vmem:[#allocation7 + $0x120] sm:$0xff]  ;;  %vm565_vm1 = vcmask 1045504  }
  0xa2   : > { %1660 = vsyncadd (%p2200_p6), [#allocation9], 4294963200  ;;  %1246 = vmatprep.subr.bf16.mxu1 %v1692_v0  ;;  %1252 = vmatprep.mubr.msk.bf16.mxu1 %vm1693_vm0, %v1692_v0  ;;  %v452_v3 = vld [vmem:[#allocation7 + $0x70] sm:$0xff]  ;;  %v491_v4 = vpack.c.bf16 %v469_v2, %v468_v1  ;;  %v453_v5 = vld [vmem:[#allocation7 + $0x78] sm:$0xff]  ;;  %vm543_vm2 = vcmask 359424   ;;  %s2066_s29 = scalar_lea.vmem [#allocation11], %s1387_s14 }
  0xa3   : > { %v475_v7 = vld [vmem:[#allocation7 + $0x128] sm:$0xf]  ;;  %v483_v8 = vpack.c.bf16 %v453_v5, %v452_v3  ;;  %v466_v10 = vld [vmem:[#allocation7 + $0xe0] sm:$0xff]  ;;  %v472_v15 = vld [vmem:[#allocation7 + $0x110] sm:$0xff]  ;;  %s968_s12 = scalar_lea.sflag [#allocation4], %s1918_s25  ;;  %p2201_p11 = scmp.ne.s32.totalorder %s2191_s30, 0 }
  0xa4   : > { %v494_v9 = vpack.c.bf16 %v475_v7, %v474_v6  ;;  %v467_v11 = vld [vmem:[#allocation7 + $0xe8] sm:$0xff]  ;;  %v450_v12 = vld [vmem:[#allocation7 + $0x60] sm:$0xff]  ;;  %1148 = vmatprep.subr.bf16.mxu0 %v491_v4  ;;  %v473_v16 = vld [vmem:[#allocation7 + $0x118] sm:$0xff]  ;;  %s975_s11 = smul.u32 (%p2201_p11), 13, %s1748_s22 }
  0xa5   : > { %v490_v13 = vpack.c.bf16 %v467_v11, %v466_v10  ;;  %v451_v14 = vld [vmem:[#allocation7 + $0x68] sm:$0xff]  ;;  %1149 = vmatpush3.bf16.msra.mxu0 %v483_v8  ;;  %v464_v19 = vld [vmem:[#allocation7 + $0xd0] sm:$0xff]  ;;  %v465_v20 = vld [vmem:[#allocation7 + $0xd8] sm:$0xff]  ;;  %v493_v21 = vpack.c.bf16 %v473_v16, %v472_v15 }
  0xa6   : > { %v567_v17 = vsel %vm565_vm1, %v494_v9, 0  ;;  %v482_v18 = vpack.c.bf16 %v451_v14, %v450_v12  ;;  %v489_v22 = vpack.c.bf16 %v465_v20, %v464_v19  ;;  %v448_v23 = vld [vmem:[#allocation7 + $0x50] sm:$0xff]  ;;  %v449_v24 = vld [vmem:[#allocation7 + $0x58] sm:$0xff]  ;;  %v470_v25 = vld [vmem:[#allocation7 + $0x100] sm:$0xff]  ;;  %s976_s17 = ssub.s32 (%p2201_p11), 25, %s975_s11 }
  0xa7   : > { %1247 = vmatpush3.bf16.msra.mxu1 %v567_v17  ;;  %1150 = vmatprep.subr.bf16.mxu0 %v490_v13  ;;  %v471_v26 = vld [vmem:[#allocation7 + $0x108] sm:$0xff]  ;;  %v462_v27 = vld [vmem:[#allocation7 + $0xc0] sm:$0xff]  ;;  %v481_v29 = vpack.c.bf16 %v449_v24, %v448_v23  ;;  %v460_v38 = vld [vmem:[#allocation7 + $0xb0] sm:$0xff]  ;;  %p977_p3 = scmp.lt.s32.totalorder (%p2201_p11), %s976_s17, 13 }
  0xa8   : > { %1248 = vmatprep.subr.bf16.mxu1 %v1692_v0  ;;  %v463_v28 = vld [vmem:[#allocation7 + $0xc8] sm:$0xff]  ;;  %v492_v32 = vpack.c.bf16 %v471_v26, %v470_v25  ;;  %v446_v34 = vld [vmem:[#allocation7 + $0x40] sm:$0xff]  ;;  %v461_v39 = vld [vmem:[#allocation7 + $0xb8] sm:$0xff] }
  0xa9   : > { %1151 = vmatpush3.bf16.msra.mxu0 %v482_v18  ;;  %v360_v30 = vld [vmem:[%s1924_s8 + $0x10] sm:$0xff]  ;;  %v363_v31 = vld [vmem:[%s1924_s8 + $0x28] sm:$0xff]  ;;  %v488_v33 = vpack.c.bf16 %v463_v28, %v462_v27  ;;  %v487_v43 = vpack.c.bf16 %v461_v39, %v460_v38  ;;  %v445_v45 = vld [vmem:[#allocation7 + $0x38] sm:$0xff] }
  0xaa   : > { %1152 = vmatprep.subr.bf16.mxu0 %v489_v22  ;;  %v447_v35 = vld [vmem:[#allocation7 + $0x48] sm:$0xff]  ;;  %v509_v36 = vld [vmem:[#allocation8 + $0x70] sm:$0xff]  ;;  %v399_v40 = vpack.c.bf16 %v363_v31, %v360_v30  ;;  %v444_v44 = vld [vmem:[#allocation7 + $0x30] sm:$0xff] }
  0xab   : > { %1249 = vmatpush3.bf16.msra.mxu1 %v493_v21  ;;  %v510_v37 = vld [vmem:[#allocation8 + $0x78] sm:$0xff]  ;;  %v480_v41 = vpack.c.bf16 %v447_v35, %v446_v34  ;;  %v458_v46 = vld [vmem:[#allocation7 + $0xa0] sm:$0xff]  ;;  %v507_v48 = vld [vmem:[#allocation8 + $0x60] sm:$0xff]  ;;  %v479_v50 = vpack.c.bf16 %v445_v45, %v444_v44 }
  0xac   : > { %1250 = vmatprep.subr.bf16.mxu1 %v1692_v0  ;;  %v518_v42 = vpack.c.bf16 %v510_v37, %v509_v36  ;;  %v459_v47 = vld [vmem:[#allocation7 + $0xa8] sm:$0xff]  ;;  %v508_v49 = vld [vmem:[#allocation8 + $0x68] sm:$0xff]  ;;  %v442_v56 = vld [vmem:[#allocation7 + $0x20] sm:$0xff] }
  0xad   : > { %1153 = vmatpush3.bf16.msra.mxu0 %v481_v29  ;;  %v366_v51 = vld [vmem:[%s1924_s8 + $0x40] sm:$0xff]  ;;  %v369_v52 = vld [vmem:[%s1924_s8 + $0x58] sm:$0xff]  ;;  %v359_v53 = vld [vmem:[%s1924_s8 + $0x8] sm:$0xff]  ;;  %v486_v54 = vpack.c.bf16 %v459_v47, %v458_v46  ;;  %v517_v55 = vpack.c.bf16 %v508_v49, %v507_v48 }
  0xae   : > { %1154 = vmatprep.subr.bf16.mxu0 %v488_v33  ;;  %v443_v57 = vld [vmem:[#allocation7 + $0x28] sm:$0xff]  ;;  %v362_v58 = vld [vmem:[%s1924_s8 + $0x20] sm:$0xff]  ;;  %v456_v59 = vld [vmem:[#allocation7 + $0x90] sm:$0xff]  ;;  %v402_v1 = vpack.c.bf16 %v369_v52, %v366_v51 }
  0xaf   : > { %1251 = vmatpush3.bf16.msra.mxu1 %v492_v32  ;;  %v457_v60 = vld [vmem:[#allocation7 + $0x98] sm:$0xff]  ;;  %v398_v61 = vpack.c.bf16 %v362_v58, %v359_v53  ;;  %v505_v62 = vld [vmem:[#allocation8 + $0x50] sm:$0xff]  ;;  %v506_v63 = vld [vmem:[#allocation8 + $0x58] sm:$0xff]  ;;  %v478_v2 = vpack.c.bf16 %v443_v57, %v442_v56 }
  0xb0   : > { %1280 = vmatprep.subr.bf16.mxu1 %v1692_v0  ;;  %v485_v3 = vpack.c.bf16 %v457_v60, %v456_v59  ;;  %v440_v4 = vld [vmem:[#allocation7 + $0x10] sm:$0xff]  ;;  %v441_v5 = vld [vmem:[#allocation7 + $0x18] sm:$0xff]  ;;  %v516_v6 = vpack.c.bf16 %v506_v63, %v505_v62  ;;  %v454_v7 = vld [vmem:[#allocation7 + $0x80] sm:$0xff] }
  0xb1   : > { %1155 = vmatpush3.bf16.msra.mxu0 %v480_v41  ;;  %601 = vmatprep.mubr.bf16.mxu0 %v398_v61  ;;  %v455_v8 = vld [vmem:[#allocation7 + $0x88] sm:$0xff]  ;;  %v503_v9 = vld [vmem:[#allocation8 + $0x40] sm:$0xff]  ;;  %v504_v10 = vld [vmem:[#allocation8 + $0x48] sm:$0xff]  ;;  %v477_v11 = vpack.c.bf16 %v441_v5, %v440_v4 }
  0xb2   : > { %1253 = vmatmul.mubr.msk.bf16.vlgmr.msra.gmra.mxu1 %vm543_vm2, %v399_v40  ;;  %1156 = vmatprep.subr.bf16.mxu0 %v487_v43  ;;  %v372_v12 = vld [vmem:[%s1924_s8 + $0x70] sm:$0xff]  ;;  %v484_v13 = vpack.c.bf16 %v455_v8, %v454_v7  ;;  %v375_v14 = vld [vmem:[%s1924_s8 + $0x88] sm:$0xff]  ;;  %v515_v17 = vpack.c.bf16 %v504_v10, %v503_v9  ;;  %v358_v22 = vld [vmem:[%s1924_s8] sm:$0xff] }
  0xb3   : > { %1281 = vmatpush3.bf16.msra.mxu1 %v518_v42  ;;  %1256 = vmatprep.mubr.msk.bf16.mxu1 %vm1693_vm0, %v1692_v0  ;;  %v438_v15 = vld [vmem:[#allocation7] sm:$0xff]  ;;  %v439_v16 = vld [vmem:[#allocation7 + $0x8] sm:$0xff]  ;;  %v405_v20 = vpack.c.bf16 %v375_v14, %v372_v12  ;;  %v361_v23 = vld [vmem:[%s1924_s8 + $0x18] sm:$0xff] }
  0xb4   : > { %1282 = vmatprep.subr.bf16.mxu1 %v1692_v0  ;;  %v501_v18 = vld [vmem:[#allocation8 + $0x30] sm:$0xff]  ;;  %v502_v19 = vld [vmem:[#allocation8 + $0x38] sm:$0xff]  ;;  %v476_v21 = vpack.c.bf16 %v439_v16, %v438_v15  ;;  %v365_v24 = vld [vmem:[%s1924_s8 + $0x38] sm:$0xff]  ;;  %v397_v27 = vpack.c.bf16 %v361_v23, %v358_v22 }
  0xb5   : > { %1157 = vmatpush3.bf16.msra.mxu0 %v479_v50  ;;  %v368_v25 = vld [vmem:[%s1924_s8 + $0x50] sm:$0xff]  ;;  %v514_v26 = vpack.c.bf16 %v502_v19, %v501_v18  ;;  %v500_v29 = vld [vmem:[#allocation8 + $0x28] sm:$0xff]  ;;  %v497_v34 = vld [vmem:[#allocation8 + $0x10] sm:$0xff] }
  0xb6   : > { %1158 = vmatprep.subr.bf16.mxu0 %v486_v54  ;;  %v499_v28 = vld [vmem:[#allocation8 + $0x20] sm:$0xff]  ;;  %v401_v30 = vpack.c.bf16 %v368_v25, %v365_v24  ;;  %v378_v31 = vld [vmem:[%s1924_s8 + $0xa0] sm:$0xff]  ;;  %v498_v35 = vld [vmem:[#allocation8 + $0x18] sm:$0xff] }
  0xb7   : > { %1283 = vmatpush3.bf16.msra.mxu1 %v517_v55  ;;  %v381_v32 = vld [vmem:[%s1924_s8 + $0xb8] sm:$0xff]  ;;  %v513_v33 = vpack.c.bf16 %v500_v29, %v499_v28  ;;  %v364_v37 = vld [vmem:[%s1924_s8 + $0x30] sm:$0xff]  ;;  %v367_v38 = vld [vmem:[%s1924_s8 + $0x48] sm:$0xff]  ;;  %v512_v41 = vpack.c.bf16 %v498_v35, %v497_v34 }
  0xb8   : > { %1284 = vmatprep.subr.bf16.mxu1 %v1692_v0  ;;  %v408_v36 = vpack.c.bf16 %v381_v32, %v378_v31  ;;  %v371_v39 = vld [vmem:[%s1924_s8 + $0x68] sm:$0xff]  ;;  %v374_v40 = vld [vmem:[%s1924_s8 + $0x80] sm:$0xff]  ;;  %v400_v42 = vpack.c.bf16 %v367_v38, %v364_v37  ;;  %v495_v43 = vld [vmem:[#allocation8] sm:$0xff] }
  0xb9   : > { %1159 = vmatpush3.bf16.msra.mxu0 %v478_v2  ;;  %v496_v44 = vld [vmem:[#allocation8 + $0x8] sm:$0xff]  ;;  %v404_v45 = vpack.c.bf16 %v374_v40, %v371_v39  ;;  %v384_v46 = vld [vmem:[%s1924_s8 + $0xd0] sm:$0xff]  ;;  %v387_v47 = vld [vmem:[%s1924_s8 + $0xe8] sm:$0xff] }
  0xba   : > { %1257 = vmatmul.mubr.msk.bf16.gmra.mxu1 %vm543_vm2, %v402_v1  ;;  %1160 = vmatprep.subr.bf16.mxu0 %v485_v3  ;;  %v511_v48 = vpack.c.bf16 %v496_v44, %v495_v43  ;;  %v411_v49 = vpack.c.bf16 %v387_v47, %v384_v46  ;;  %v370_v50 = vld [vmem:[%s1924_s8 + $0x60] sm:$0xff]  ;;  %v373_v51 = vld [vmem:[%s1924_s8 + $0x78] sm:$0xff]  ;;  %v380_v53 = vld [vmem:[%s1924_s8 + $0xb0] sm:$0xff] }
  0xbb   : > { %1260 = vmatprep.mubr.msk.bf16.mxu1 %vm1693_vm0, %v1692_v0  ;;  %1285 = vmatpush3.bf16.msra.mxu1 %v516_v6  ;;  %v377_v52 = vld [vmem:[%s1924_s8 + $0x98] sm:$0xff]  ;;  %v403_v54 = vpack.c.bf16 %v373_v51, %v370_v50  ;;  %v390_v56 = vld [vmem:[%s1924_s8 + $0x100] sm:$0xff]  ;;  %v376_v59 = vld [vmem:[%s1924_s8 + $0x90] sm:$0xff] }
  0xbc   : > { %1286 = vmatprep.subr.bf16.mxu1 %v1692_v0  ;;  %v407_v55 = vpack.c.bf16 %v380_v53, %v377_v52  ;;  %v393_v57 = vld [vmem:[%s1924_s8 + $0x118] sm:$0xff]  ;;  %v379_v60 = vld [vmem:[%s1924_s8 + $0xa8] sm:$0xff]  ;;  %v386_v62 = vld [vmem:[%s1924_s8 + $0xe0] sm:$0xff] }
  0xbd   : > { %1161 = vmatpush3.bf16.msra.mxu0 %v477_v11  ;;  %v414_v58 = vpack.c.bf16 %v393_v57, %v390_v56  ;;  %v383_v61 = vld [vmem:[%s1924_s8 + $0xc8] sm:$0xff]  ;;  %v406_v63 = vpack.c.bf16 %v379_v60, %v376_v59  ;;  %v396_v2 = vld [vmem:[%s1924_s8 + $0x130] sm:$0xff]  ;;  %v382_v4 = vld [vmem:[%s1924_s8 + $0xc0] sm:$0xff] }
  0xbe   : > { %1162 = vmatprep.subr.bf16.mxu0 %v484_v13  ;;  %v410_v1 = vpack.c.bf16 %v386_v62, %v383_v61  ;;  %v417_v3 = vpack.c.bf16 %v396_v2, %v396_v2  ;;  %v385_v5 = vld [vmem:[%s1924_s8 + $0xd8] sm:$0xff]  ;;  %v392_v7 = vld [vmem:[%s1924_s8 + $0x110] sm:$0xff]  ;;  %v391_v14 = vld [vmem:[%s1924_s8 + $0x108] sm:$0xff] }
  0xbf   : > { %1287 = vmatpush3.bf16.msra.mxu1 %v515_v17  ;;  %v389_v6 = vld [vmem:[%s1924_s8 + $0xf8] sm:$0xff]  ;;  %v409_v8 = vpack.c.bf16 %v385_v5, %v382_v4  ;;  %v418_v10 = vld [vmem:[%s1932_s15] sm:$0xff]  ;;  %v395_v15 = vld [vmem:[%s1924_s8 + $0x128] sm:$0xff] }
  0xc0   : > { %1288 = vmatprep.subr.bf16.mxu1 %v1692_v0  ;;  %v413_v9 = vpack.c.bf16 %v392_v7, %v389_v6  ;;  %v419_v11 = vld [vmem:[%s1932_s15 + $0x8] sm:$0xff]  ;;  %v388_v13 = vld [vmem:[%s1924_s8 + $0xf0] sm:$0xff]  ;;  %v416_v17 = vpack.c.bf16 %v395_v15, %v395_v15  ;;  %v421_v19 = vld [vmem:[%s1932_s15 + $0x18] sm:$0xff] }
  0xc1   : > { %1163 = vmatpush3.bf16.msra.mxu0 %v476_v21  ;;  %v431_v12 = vpack.c.bf16 %v419_v11, %v418_v10  ;;  %v412_v16 = vpack.c.bf16 %v391_v14, %v388_v13  ;;  %v420_v18 = vld [vmem:[%s1932_s15 + $0x10] sm:$0xff]  ;;  %v422_v23 = vld [vmem:[%s1932_s15 + $0x20] sm:$0xff]  ;;  %v423_v24 = vld [vmem:[%s1932_s15 + $0x28] sm:$0xff] }
  0xc2   : > { %1261 = vmatmul.mubr.msk.bf16.gmra.mxu1 %vm543_vm2, %v405_v20  ;;  %1324 = vmatprep.subr.bf16.mxu0 %v1692_v0  ;;  %v432_v20 = vpack.c.bf16 %v421_v19, %v420_v18  ;;  %v394_v21 = vld [vmem:[%s1924_s8 + $0x120] sm:$0xff]  ;;  %v433_v25 = vpack.c.bf16 %v423_v24, %v422_v23  ;;  %v531_v34 = vld [vmem:[#allocation10 + $0x60] sm:$0xff]  ;;  %v526_v50 = vld [vmem:[#allocation10 + $0x38] sm:$0xff] }
  0xc3   : > { %1264 = vmatprep.mubr.msk.bf16.mxu1 %vm1693_vm0, %v1692_v0  ;;  %1289 = vmatpush3.bf16.msra.mxu1 %v514_v26  ;;  %v415_v22 = vpack.c.bf16 %v394_v21, %v394_v21  ;;  %v424_v26 = vld [vmem:[%s1932_s15 + $0x30] sm:$0xff]  ;;  %v426_v32 = vld [vmem:[%s1932_s15 + $0x40] sm:$0xff]  ;;  %v429_v39 = vld [vmem:[%s1932_s15 + $0x58] sm:$0xff] }
  0xc4   : > { %602 = vmatmul.mubr.bf16.vlgmr.msra.gmra.mxu0 %v397_v27  ;;  %1290 = vmatprep.subr.bf16.mxu1 %v1692_v0  ;;  %v425_v27 = vld [vmem:[%s1932_s15 + $0x38] sm:$0xff]  ;;  %v533_v29 = vld [vmem:[#allocation10 + $0x70] sm:$0xff]  ;;  %v532_v35 = vld [vmem:[#allocation10 + $0x68] sm:$0xff] }
  0xc5   : > { %609 = vmatprep.mubr.bf16.mxu0 %v401_v30  ;;  %v434_v28 = vpack.c.bf16 %v425_v27, %v424_v26  ;;  %v534_v30 = vld [vmem:[#allocation10 + $0x78] sm:$0xff]  ;;  %v430_v44 = vld [vmem:[%s1932_s15 + $0x60] sm:$0xff] }
  0xc6   : > { %v542_v31 = vpack.c.bf16 %v534_v30, %v533_v29  ;;  %v428_v38 = vld [vmem:[%s1932_s15 + $0x50] sm:$0xff]  ;;  %v528_v46 = vld [vmem:[#allocation10 + $0x48] sm:$0xff]  ;;  %v523_v52 = vld [vmem:[#allocation10 + $0x20] sm:$0xff] }
  0xc7   : > { %1291 = vmatpush3.bf16.msra.mxu1 %v513_v33  ;;  %v427_v33 = vld [vmem:[%s1932_s15 + $0x48] sm:$0xff]  ;;  %v436_v40 = vpack.c.bf16 %v429_v39, %v428_v38  ;;  %v522_v56 = vld [vmem:[#allocation10 + $0x18] sm:$0xff] }
  0xc8   : > { %1292 = vmatprep.subr.bf16.mxu1 %v1692_v0  ;;  %1325 = vmatpush3.bf16.msra.mxu0 %v542_v31  ;;  %v435_v37 = vpack.c.bf16 %v427_v33, %v426_v32  ;;  %v524_v53 = vld [vmem:[#allocation10 + $0x28] sm:$0xff] }
  0xc9   : > { %1326 = vmatprep.subr.bf16.mxu0 %v1692_v0  ;;  %v520_v59 = vld [vmem:[#allocation10 + $0x8] sm:$0xff] }
  0xca   : > { %1265 = vmatmul.mubr.msk.bf16.gmra.mxu1 %vm543_vm2, %v408_v36  ;;  %v541_v36 = vpack.c.bf16 %v532_v35, %v531_v34 }
  0xcb   : > { %1268 = vmatprep.mubr.msk.bf16.mxu1 %vm1693_vm0, %v1692_v0  ;;  %1293 = vmatpush3.bf16.msra.mxu1 %v512_v41  ;;  %v529_v41 = vld [vmem:[#allocation10 + $0x50] sm:$0xff] }
  0xcc   : > { %610 = vmatmul.mubr.bf16.gmra.mxu0 %v400_v42  ;;  %1294 = vmatprep.subr.bf16.mxu1 %v1692_v0  ;;  %v530_v42 = vld [vmem:[#allocation10 + $0x58] sm:$0xff] }
  0xcd   : > { %617 = vmatprep.mubr.bf16.mxu0 %v404_v45  ;;  %1327 = vmatpush3.bf16.msra.mxu0 %v541_v36  ;;  %v540_v43 = vpack.c.bf16 %v530_v42, %v529_v41  ;;  %v527_v45 = vld [vmem:[#allocation10 + $0x40] sm:$0xff] }
  0xce   : > { %1328 = vmatprep.subr.bf16.mxu0 %v1692_v0  ;;  %v539_v47 = vpack.c.bf16 %v528_v46, %v527_v45 }
  0xcf   : > { %1295 = vmatpush3.bf16.msra.mxu1 %v511_v48  ;;  %v437_v48 = vpack.c.bf16 %v430_v44, %v430_v44 }
  0xd0   : > { %1368 = vmatprep.subr.bf16.mxu1 %v1692_v0 }
  0xd1   : > { %1329 = vmatpush3.bf16.msra.mxu0 %v540_v43 }
  0xd2   : > { %1269 = vmatmul.mubr.msk.bf16.gmra.mxu1 %vm543_vm2, %v411_v49  ;;  %1330 = vmatprep.subr.bf16.mxu0 %v1692_v0  ;;  %v525_v49 = vld [vmem:[#allocation10 + $0x30] sm:$0xff] }
  0xd3   : > { %1272 = vmatprep.mubr.msk.bf16.mxu1 %vm1693_vm0, %v1692_v0  ;;  %v538_v51 = vpack.c.bf16 %v526_v50, %v525_v49 }
  0xd4   : > { %618 = vmatmul.mubr.bf16.gmra.mxu0 %v403_v54  ;;  %v537_v54 = vpack.c.bf16 %v524_v53, %v523_v52 }
  0xd5   : > { %625 = vmatprep.mubr.bf16.mxu0 %v407_v55  ;;  %1331 = vmatpush3.bf16.msra.mxu0 %v539_v47  ;;  %v521_v55 = vld [vmem:[#allocation10 + $0x10] sm:$0xff] }
  0xd6   : > { %1332 = vmatprep.subr.bf16.mxu0 %v1692_v0  ;;  %v536_v57 = vpack.c.bf16 %v522_v56, %v521_v55 }
  0xd9   : > { %1333 = vmatpush3.bf16.msra.mxu0 %v538_v51 }
  0xda   : > { %1273 = vmatmul.mubr.msk.bf16.gmra.mxu1 %vm543_vm2, %v414_v58  ;;  %1334 = vmatprep.subr.bf16.mxu0 %v1692_v0  ;;  %v519_v58 = vld [vmem:[#allocation10] sm:$0xff] }
  0xdb   : > { %1276 = vmatprep.mubr.msk.bf16.mxu1 %vm1693_vm0, %v1692_v0  ;;  %v535_v60 = vpack.c.bf16 %v520_v59, %v519_v58 }
  0xdc   : > { %626 = vmatmul.mubr.bf16.gmra.mxu0 %v406_v63 }
  0xdd   : > { %633 = vmatprep.mubr.bf16.mxu0 %v410_v1  ;;  %1335 = vmatpush3.bf16.msra.mxu0 %v537_v54 }
  0xde   : > { %1336 = vmatprep.subr.bf16.mxu0 %v1692_v0 }
  0xe1   : > { %1337 = vmatpush3.bf16.msra.mxu0 %v536_v57 }
  0xe2   : > { %1277 = vmatmul.mubr.msk.bf16.gmra.mxu1 %vm543_vm2, %v417_v3  ;;  %1338 = vmatprep.subr.bf16.mxu0 %v1692_v0 }
  0xe3   : > { %1296 = vmatprep.mubr.msk.bf16.mxu1 %vm1693_vm0, %v1692_v0 }
  0xe4   : > { %634 = vmatmul.mubr.bf16.gmra.mxu0 %v409_v8 }
  0xe5   : > { %641 = vmatprep.mubr.bf16.mxu0 %v413_v9  ;;  %1339 = vmatpush3.bf16.msra.mxu0 %v535_v60 }
  0xea   : > { %1297 = vmatmul.mubr.bf16.vlgmr.msra.gmra.mxu1 %v431_v12 }
  0xeb   : > { %1300 = vmatprep.mubr.msk.bf16.mxu1 %vm1693_vm0, %v1692_v0  ;;  %1376 = vmatpush3.bf16.msra.mxu1 %v542_v31 }
  0xec   : > { %642 = vmatmul.mubr.bf16.gmra.mxu0 %v412_v16  ;;  %1369 = vmatprep.subr.bf16.mxu1 %v1692_v0 }
  0xed   : > { %649 = vmatprep.mubr.bf16.mxu0 %v416_v17 }
  0xef   : > { %1377 = vmatpush3.bf16.msra.mxu1 %v541_v36 }
  0xf0   : > { %1370 = vmatprep.subr.bf16.mxu1 %v1692_v0 }
  0xf2   : > { %1301 = vmatmul.mubr.bf16.gmra.mxu1 %v432_v20 }
  0xf3   : > { %1304 = vmatprep.mubr.msk.bf16.mxu1 %vm1693_vm0, %v1692_v0  ;;  %1378 = vmatpush3.bf16.msra.mxu1 %v540_v43 }
  0xf4   : > { %650 = vmatmul.mubr.bf16.gmra.mxu0 %v415_v22  ;;  %1371 = vmatprep.subr.bf16.mxu1 %v1692_v0 }
  0xf5   : > { %1340 = vmatprep.mubr.msk.bf16.mxu0 %vm1693_vm0, %v1692_v0 }
  0xf7   : > { %1379 = vmatpush3.bf16.msra.mxu1 %v539_v47 }
  0xf8   : > { %1372 = vmatprep.subr.bf16.mxu1 %v1692_v0 }
  0xfa   : > { %1305 = vmatmul.mubr.bf16.gmra.mxu1 %v433_v25 }
  0xfb   : > { %1308 = vmatprep.mubr.msk.bf16.mxu1 %vm1693_vm0, %v1692_v0  ;;  %1380 = vmatpush3.bf16.msra.mxu1 %v538_v51 }
  0xfc   : > { %1373 = vmatprep.subr.bf16.mxu1 %v1692_v0 }
  0xff   : > { %1381 = vmatpush3.bf16.msra.mxu1 %v537_v54 }
 0x100   : > { %1374 = vmatprep.subr.bf16.mxu1 %v1692_v0 }
 0x102   : > { %1309 = vmatmul.mubr.bf16.gmra.mxu1 %v434_v28 }
 0x103   : > { %1312 = vmatprep.mubr.msk.bf16.mxu1 %vm1693_vm0, %v1692_v0  ;;  %1382 = vmatpush3.bf16.msra.mxu1 %v536_v57 }
 0x104   : > { %1375 = vmatprep.subr.bf16.mxu1 %v1692_v0 }
 0x107   : > { %1383 = vmatpush3.bf16.msra.mxu1 %v535_v60 }
 0x10a   : > { %1313 = vmatmul.mubr.bf16.gmra.mxu1 %v435_v37 }
 0x10b   : > { %1316 = vmatprep.mubr.msk.bf16.mxu1 %vm1693_vm0, %v1692_v0 }
 0x112   : > { %1317 = vmatmul.mubr.bf16.gmra.mxu1 %v436_v40 }
 0x113   : > { %1320 = vmatprep.mubr.msk.bf16.mxu1 %vm1693_vm0, %v1692_v0 }
 0x11a   : > { %1321 = vmatmul.mubr.bf16.gmra.mxu1 %v437_v48 }
 0x11b   : > { %1364 = vmatprep.mubr.msk.bf16.mxu1 %vm1693_vm0, %v1692_v0 }
 0x172   : > { %v691_v61 = vpop.f32.mrf.mxu1 }
 0x174   : > { %v1254_v62 = vpop.f32.mrf.mxu1 }
 0x176   : > { %v694_v63 = vpop.f32.mrf.mxu1 }
 0x178   : > { %v1255_v1 = vpop.f32.mrf.mxu1 }
 0x17a   : > { %v699_v2 = vpop.f32.mrf.mxu1 }
 0x17c   : > { %v1258_v3 = vpop.f32.mrf.mxu1 }
 0x17e   : > { %v702_v4 = vpop.f32.mrf.mxu1 }
 0x180   : > { %v1259_v5 = vpop.f32.mrf.mxu1 }
 0x182   : > { %v707_v6 = vpop.f32.mrf.mxu1 }
 0x184   : > { %v1262_v7 = vpop.f32.mrf.mxu1  ;;  %v1164_v8 = vpop.f32.mrf.mxu0 }
 0x186   : > { %v710_v9 = vpop.f32.mrf.mxu1  ;;  %v1165_v10 = vpop.f32.mrf.mxu0 }
 0x187   : > { %v1166_v11 = vadd.f32 %v1165_v10, %v1164_v8 }
 0x188   : > { %v1263_v12 = vpop.f32.mrf.mxu1  ;;  %v1167_v13 = vpop.f32.mrf.mxu0 }
 0x189   : > { %v692_v14 = vadd.f32 %v1166_v11, %v691_v61 }
 0x18a   : > { %v715_v15 = vpop.f32.mrf.mxu1  ;;  %v1168_v16 = vpop.f32.mrf.mxu0 }
 0x18b   : > { %928 = vst [vmem:[%s2066_s29] sm:$0xff] %v692_v14  ;;  %v1169_v17 = vadd.f32 %v1168_v16, %v1167_v13 }
 0x18c   : > { %v1266_v18 = vpop.f32.mrf.mxu1  ;;  %v1170_v19 = vpop.f32.mrf.mxu0 }
 0x18d   : > { %v695_v20 = vadd.f32 %v1169_v17, %v694_v63 }
 0x18e   : > { %v718_v21 = vpop.f32.mrf.mxu1  ;;  %v1171_v22 = vpop.f32.mrf.mxu0 }
 0x18f   : > { %929 = vst [vmem:[%s2066_s29 + $0x18] sm:$0xff] %v695_v20  ;;  %v1172_v23 = vadd.f32 %v1171_v22, %v1170_v19 }
 0x190   : > { %v1267_v24 = vpop.f32.mrf.mxu1  ;;  %v1173_v25 = vpop.f32.mrf.mxu0 }
 0x191   : > { %v700_v26 = vadd.f32 %v1172_v23, %v699_v2 }
 0x192   : > { %v723_v27 = vpop.f32.mrf.mxu1  ;;  %v1174_v28 = vpop.f32.mrf.mxu0 }
 0x193   : > { %930 = vst [vmem:[%s2066_s29 + $0x30] sm:$0xff] %v700_v26  ;;  %v1175_v29 = vadd.f32 %v1174_v28, %v1173_v25 }
 0x194   : > { %v1270_v30 = vpop.f32.mrf.mxu1  ;;  %v1176_v31 = vpop.f32.mrf.mxu0 }
 0x195   : > { %v703_v32 = vadd.f32 %v1175_v29, %v702_v4 }
 0x196   : > { %v726_v33 = vpop.f32.mrf.mxu1  ;;  %v1177_v34 = vpop.f32.mrf.mxu0 }
 0x197   : > { %931 = vst [vmem:[%s2066_s29 + $0x48] sm:$0xff] %v703_v32  ;;  %v1178_v35 = vadd.f32 %v1177_v34, %v1176_v31 }
 0x198   : > { %v1271_v36 = vpop.f32.mrf.mxu1  ;;  %v1179_v37 = vpop.f32.mrf.mxu0 }
 0x199   : > { %v708_v38 = vadd.f32 %v1178_v35, %v707_v6 }
 0x19a   : > { %v731_v39 = vpop.f32.mrf.mxu1  ;;  %v1180_v40 = vpop.f32.mrf.mxu0 }
 0x19b   : > { %932 = vst [vmem:[%s2066_s29 + $0x60] sm:$0xff] %v708_v38  ;;  %v1181_v41 = vadd.f32 %v1180_v40, %v1179_v37 }
 0x19c   : > { %v1274_v42 = vpop.f32.mrf.mxu1  ;;  %v1182_v43 = vpop.f32.mrf.mxu0 }
 0x19d   : > { %v711_v44 = vadd.f32 %v1181_v41, %v710_v9 }
 0x19e   : > { %v734_v45 = vpop.f32.mrf.mxu1  ;;  %v1183_v46 = vpop.f32.mrf.mxu0 }
 0x19f   : > { %933 = vst [vmem:[%s2066_s29 + $0x78] sm:$0xff] %v711_v44  ;;  %v1184_v47 = vadd.f32 %v1183_v46, %v1182_v43 }
 0x1a0   : > { %v1275_v48 = vpop.f32.mrf.mxu1  ;;  %v1185_v49 = vpop.f32.mrf.mxu0 }
 0x1a1   : > { %v716_v50 = vadd.f32 %v1184_v47, %v715_v15 }
 0x1a2   : > { %v739_v51 = vpop.f32.mrf.mxu1  ;;  %v1186_v52 = vpop.f32.mrf.mxu0 }
 0x1a3   : > { %934 = vst [vmem:[%s2066_s29 + $0x90] sm:$0xff] %v716_v50  ;;  %v1187_v53 = vadd.f32 %v1186_v52, %v1185_v49 }
 0x1a4   : > { %v1278_v54 = vpop.f32.mrf.mxu1  ;;  %v1188_v55 = vpop.f32.mrf.mxu0 }
 0x1a5   : > { %v719_v56 = vadd.f32 %v1187_v53, %v718_v21 }
 0x1a6   : > { %v742_v57 = vpop.f32.mrf.mxu1  ;;  %v1189_v58 = vpop.f32.mrf.mxu0 }
 0x1a7   : > { %935 = vst [vmem:[%s2066_s29 + $0xa8] sm:$0xff] %v719_v56  ;;  %v1190_v59 = vadd.f32 %v1189_v58, %v1188_v55 }
 0x1a8   : > { %v1279_v60 = vpop.f32.mrf.mxu1  ;;  %v1191_v61 = vpop.f32.mrf.mxu0 }
 0x1a9   : > { %v724_v62 = vadd.f32 %v1190_v59, %v723_v27 }
 0x1aa   : > { %v779_v63 = vpop.f32.mrf.mxu1  ;;  %v1192_v1 = vpop.f32.mrf.mxu0 }
 0x1ab   : > { %941 = vst [vmem:[%s2066_s29 + $0x8] sm:$0xff] %v779_v63  ;;  %936 = vst [vmem:[%s2066_s29 + $0xc0] sm:$0xff] %v724_v62  ;;  %v1193_v2 = vadd.f32 %v1192_v1, %v1191_v61 }
 0x1ac   : > { %v1298_v3 = vpop.f32.mrf.mxu1  ;;  %v1194_v4 = vpop.f32.mrf.mxu0 }
 0x1ad   : > { %v727_v5 = vadd.f32 %v1193_v2, %v726_v33 }
 0x1ae   : > { %v782_v6 = vpop.f32.mrf.mxu1  ;;  %v1195_v8 = vpop.f32.mrf.mxu0 }
 0x1af   : > { %v833_v7 = vpack.c.bf16 %v782_v6, %v779_v63  ;;  %942 = vst [vmem:[%s2066_s29 + $0x20] sm:$0xff] %v782_v6  ;;  %937 = vst [vmem:[%s2066_s29 + $0xd8] sm:$0xff] %v727_v5  ;;  %v1196_v9 = vadd.f32 %v1195_v8, %v1194_v4 }
 0x1b0   : > { %v1299_v10 = vpop.f32.mrf.mxu1  ;;  %v1197_v11 = vpop.f32.mrf.mxu0 }
 0x1b1   : > { %1341 = vmatmul.mubr.bf16.vlgmr.msra.gmra.mxu0 %v833_v7  ;;  %v732_v12 = vadd.f32 %v1196_v9, %v731_v39 }
 0x1b2   : > { %v787_v13 = vpop.f32.mrf.mxu1  ;;  %1344 = vmatprep.mubr.msk.bf16.mxu0 %vm1693_vm0, %v1692_v0  ;;  %v1198_v14 = vpop.f32.mrf.mxu0 }
 0x1b3   : > { %943 = vst [vmem:[%s2066_s29 + $0x38] sm:$0xff] %v787_v13  ;;  %938 = vst [vmem:[%s2066_s29 + $0xf0] sm:$0xff] %v732_v12  ;;  %v1199_v15 = vadd.f32 %v1198_v14, %v1197_v11 }
 0x1b4   : > { %v1302_v16 = vpop.f32.mrf.mxu1  ;;  %v1200_v17 = vpop.f32.mrf.mxu0 }
 0x1b5   : > { %v735_v18 = vadd.f32 %v1199_v15, %v734_v45 }
 0x1b6   : > { %v790_v19 = vpop.f32.mrf.mxu1  ;;  %v1201_v21 = vpop.f32.mrf.mxu0 }
 0x1b7   : > { %v834_v20 = vpack.c.bf16 %v790_v19, %v787_v13  ;;  %944 = vst [vmem:[%s2066_s29 + $0x50] sm:$0xff] %v790_v19  ;;  %939 = vst [vmem:[%s2066_s29 + $0x108] sm:$0xff] %v735_v18  ;;  %v1202_v22 = vadd.f32 %v1201_v21, %v1200_v17 }
 0x1b8   : > { %v1303_v23 = vpop.f32.mrf.mxu1  ;;  %v1203_v24 = vpop.f32.mrf.mxu0 }
 0x1b9   : > { %1345 = vmatmul.mubr.bf16.gmra.mxu0 %v834_v20  ;;  %v740_v25 = vadd.f32 %v1202_v22, %v739_v51 }
 0x1ba   : > { %v795_v26 = vpop.f32.mrf.mxu1  ;;  %1348 = vmatprep.mubr.msk.bf16.mxu0 %vm1693_vm0, %v1692_v0  ;;  %v1204_v27 = vpop.f32.mrf.mxu0 }
 0x1bb   : > { %945 = vst [vmem:[%s2066_s29 + $0x68] sm:$0xff] %v795_v26  ;;  %940 = vst [vmem:[%s2066_s29 + $0x120] sm:$0xff] %v740_v25 }
 0x1bc   : > { %v1306_v28 = vpop.f32.mrf.mxu1 }
 0x1be   : > { %v798_v29 = vpop.f32.mrf.mxu1 }
 0x1bf   : > { %v835_v30 = vpack.c.bf16 %v798_v29, %v795_v26  ;;  %946 = vst [vmem:[%s2066_s29 + $0x80] sm:$0xff] %v798_v29 }
 0x1c0   : > { %v1307_v31 = vpop.f32.mrf.mxu1 }
 0x1c1   : > { %1349 = vmatmul.mubr.bf16.gmra.mxu0 %v835_v30 }
 0x1c2   : > { %v803_v32 = vpop.f32.mrf.mxu1  ;;  %1352 = vmatprep.mubr.msk.bf16.mxu0 %vm1693_vm0, %v1692_v0 }
 0x1c3   : > { %947 = vst [vmem:[%s2066_s29 + $0x98] sm:$0xff] %v803_v32 }
 0x1c4   : > { %v1310_v33 = vpop.f32.mrf.mxu1 }
 0x1c6   : > { %v806_v34 = vpop.f32.mrf.mxu1 }
 0x1c7   : > { %v836_v35 = vpack.c.bf16 %v806_v34, %v803_v32  ;;  %948 = vst [vmem:[%s2066_s29 + $0xb0] sm:$0xff] %v806_v34 }
 0x1c8   : > { %v1311_v36 = vpop.f32.mrf.mxu1 }
 0x1c9   : > { %1353 = vmatmul.mubr.bf16.gmra.mxu0 %v836_v35 }
 0x1ca   : > { %v811_v37 = vpop.f32.mrf.mxu1  ;;  %1356 = vmatprep.mubr.msk.bf16.mxu0 %vm1693_vm0, %v1692_v0 }
 0x1cb   : > { %949 = vst [vmem:[%s2066_s29 + $0xc8] sm:$0xff] %v811_v37 }
 0x1cc   : > { %v1314_v38 = vpop.f32.mrf.mxu1 }
 0x1ce   : > { %v814_v39 = vpop.f32.mrf.mxu1 }
 0x1cf   : > { %v837_v40 = vpack.c.bf16 %v814_v39, %v811_v37  ;;  %950 = vst [vmem:[%s2066_s29 + $0xe0] sm:$0xff] %v814_v39 }
 0x1d0   : > { %v1315_v41 = vpop.f32.mrf.mxu1 }
 0x1d1   : > { %1357 = vmatmul.mubr.bf16.gmra.mxu0 %v837_v40 }
 0x1d2   : > { %v819_v42 = vpop.f32.mrf.mxu1  ;;  %1360 = vmatprep.mubr.msk.bf16.mxu0 %vm1693_vm0, %v1692_v0 }
 0x1d3   : > { %951 = vst [vmem:[%s2066_s29 + $0xf8] sm:$0xff] %v819_v42 }
 0x1d4   : > { %v1318_v43 = vpop.f32.mrf.mxu1 }
 0x1d6   : > { %v822_v44 = vpop.f32.mrf.mxu1 }
 0x1d7   : > { %v838_v45 = vpack.c.bf16 %v822_v44, %v819_v42  ;;  %952 = vst [vmem:[%s2066_s29 + $0x110] sm:$0xff] %v822_v44 }
 0x1d8   : > { %v1319_v46 = vpop.f32.mrf.mxu1 }
 0x1d9   : > { %1361 = vmatmul.mubr.bf16.gmra.mxu0 %v838_v45 }
 0x1da   : > { %v827_v47 = vpop.f32.mrf.mxu1 }
 0x1db   : > { %v839_v48 = vpack.c.bf16 %v827_v47, %v827_v47  ;;  %953 = vst [vmem:[%s2066_s29 + $0x128] sm:$0xff] %v827_v47 }
 0x1dc   : > { %v1322_v49 = vpop.f32.mrf.mxu1 }
 0x1dd   : > { %1365 = vmatmul.mubr.bf16.vlgmr.msra.gmra.mxu1 %v839_v48 }
 0x1de   : > { %v830_v50 = vpop.f32.mrf.mxu1 }
 0x1e0   : > { %v1323_v51 = vpop.f32.mrf.mxu1 }
 0x271   : > { %v874_v0 = vpop.f32.mrf.mxu0 }
 0x272   : > { %954 = vst [vmem:[%s2066_s29 + $0x10] sm:$0xff] %v874_v0 }
 0x273   : > { %v1342_v52 = vpop.f32.mrf.mxu0 }
 0x275   : > { %v877_v53 = vpop.f32.mrf.mxu0 }
 0x276   : > { %955 = vst [vmem:[%s2066_s29 + $0x28] sm:$0xff] %v877_v53 }
 0x277   : > { %v1343_v54 = vpop.f32.mrf.mxu0 }
 0x279   : > { %v882_v55 = vpop.f32.mrf.mxu0 }
 0x27a   : > { %956 = vst [vmem:[%s2066_s29 + $0x40] sm:$0xff] %v882_v55 }
 0x27b   : > { %v1346_v56 = vpop.f32.mrf.mxu0 }
 0x27d   : > { %v885_v57 = vpop.f32.mrf.mxu0 }
 0x27e   : > { %957 = vst [vmem:[%s2066_s29 + $0x58] sm:$0xff] %v885_v57 }
 0x27f   : > { %v1347_v58 = vpop.f32.mrf.mxu0 }
 0x281   : > { %v890_v59 = vpop.f32.mrf.mxu0 }
 0x282   : > { %958 = vst [vmem:[%s2066_s29 + $0x70] sm:$0xff] %v890_v59 }
 0x283   : > { %v1350_v60 = vpop.f32.mrf.mxu0 }
 0x285   : > { %v893_v61 = vpop.f32.mrf.mxu0 }
 0x286   : > { %959 = vst [vmem:[%s2066_s29 + $0x88] sm:$0xff] %v893_v61 }
 0x287   : > { %v1351_v62 = vpop.f32.mrf.mxu0 }
 0x289   : > { %v898_v63 = vpop.f32.mrf.mxu0 }
 0x28a   : > { %960 = vst [vmem:[%s2066_s29 + $0xa0] sm:$0xff] %v898_v63 }
 0x28b   : > { %v1354_v1 = vpop.f32.mrf.mxu0 }
 0x28d   : > { %v901_v2 = vpop.f32.mrf.mxu0 }
 0x28e   : > { %961 = vst [vmem:[%s2066_s29 + $0xb8] sm:$0xff] %v901_v2 }
 0x28f   : > { %v1355_v3 = vpop.f32.mrf.mxu0 }
 0x291   : > { %v906_v4 = vpop.f32.mrf.mxu0 }
 0x292   : > { %962 = vst [vmem:[%s2066_s29 + $0xd0] sm:$0xff] %v906_v4 }
 0x293   : > { %v1358_v5 = vpop.f32.mrf.mxu0 }
 0x295   : > { %v909_v6 = vpop.f32.mrf.mxu0 }
 0x296   : > { %963 = vst [vmem:[%s2066_s29 + $0xe8] sm:$0xff] %v909_v6 }
 0x297   : > { %v1359_v7 = vpop.f32.mrf.mxu0 }
 0x299   : > { %v914_v8 = vpop.f32.mrf.mxu0 }
 0x29a   : > { %964 = vst [vmem:[%s2066_s29 + $0x100] sm:$0xff] %v914_v8 }
 0x29b   : > { %v1362_v9 = vpop.f32.mrf.mxu0 }
 0x29d   : > { %v917_v10 = vpop.f32.mrf.mxu0  ;;  %v922_v11 = vpop.f32.mrf.mxu1 }
 0x29e   : > { %965 = vst [vmem:[%s2066_s29 + $0x118] sm:$0xff] %v917_v10  ;;  %966 = vst [vmem:[%s2066_s29 + $0x130] sm:$0xff] %v922_v11 }
 0x29f   : > { %v1363_v12 = vpop.f32.mrf.mxu0  ;;  %v1366_v13 = vpop.f32.mrf.mxu1  ;;  %974 = sbr.rel (!%p2201_p11) target bundleno = 704 (0x2c0), region = 64 }
 0x2a1   : > { %v925_v14 = vpop.f32.mrf.mxu1 }
 0x2a3   : > { %v1367_v15 = vpop.f32.mrf.mxu1 }
 0x2a4   : > { %s2213_s17 = smov (!%p977_p3, %s976_s17), 13 }
 0x2a5   : > { %s2121_s10 = smul.u32 384, %s2213_s17 }
 0x2a7   : > { %s982_s28 = ssub.s32 4992, %s2121_s10 }
 0x2a8   : > { %983 = vsyncadd %s968_s12, %s982_s28  ;;  %p1142_p0 = scmp.ne.s32.totalorder %s2121_s10, 0  ;;  %s1426_s30 = smul.u32 4992, %s1748_s22 }
 0x2a9   : > { %s989_s9 = sshll.u32 %s2066_s29, 4  ;;  %s1694_s8 = smov [#allocation11]   ;;  %s2134_s9 = int_to_ptr.vmem [resolvable:$true] %s989_s9 }
 0x2aa   : > { %s2132_s14 = scalar_lea.hbm %s2184_s5, %s1426_s30  ;;  %s1603_s26 = scalar_lea.vmem %s2134_s9, %s2121_s10 }
 0x2ab   : > { %p1604_p9 = scmp.ne.s32.totalorder %s2134_s9, %s1603_s26  ;;  %s1607_s0 = sshll.u32 %s1694_s8, 4  ;;  %s1608_s0 = int_to_ptr.vmem [resolvable:$false] %s1607_s0 }
 0x2ac   : > { %s1609_s22 = scalar_lea.vmem %s1608_s0, 9984  ;;  %p1610_p7 = scmp.lt.s32.totalorder %s2134_s9, %s1608_s0 }
 0x2ad   : > { %p1605_p8 = pnand %p1604_p9, %p1142_p0  ;;  %p1611_p2 = scmp.lt.s32.totalorder %s1609_s22, %s1603_s26 }
 0x2af   : > { %p1606_p12 = pneg %p1605_p8  ;;  %p1612_p4 = por %p1611_p2, %p1610_p7 }
 0x2b1   : > { %p1613_p10 = pnand %p1612_p4, %p1606_p12 }
 0x2b3   : > { %1616 = shalt.err (!%p1613_p10)
}
 0x2b4   : > { %s1617_s7 = scalar_lea.hbm %s2132_s14, %s2121_s10  ;;  %s1621_s29 = scalar_lea.hbm %s2184_s5, 9600 }
 0x2b5   : > { %p1618_p13 = scmp.ne.s32.totalorder %s2132_s14, %s1617_s7  ;;  %p1622_p6 = scmp.lt.s32.totalorder %s2132_s14, %s2184_s5 }
 0x2b6   : > { %p1623_p11 = scmp.lt.s32.totalorder %s1621_s29, %s1617_s7 }
 0x2b7   : > { %p1619_p5 = pnand %p1618_p13, %p1142_p0 }
 0x2b8   : > { %p1624_p3 = por %p1623_p11, %p1622_p6 }
 0x2b9   : > { %p1620_p1 = pneg %p1619_p5 }
 0x2bb   : > { %p1625_p9 = pnand %p1624_p3, %p1620_p1 }
 0x2bd   : > { %1628 = shalt.err (!%p1625_p9)
}
 0x2be   : > { %s1695_s28 = smov 384   ;;  %s1696_s30 = smov 24  }
 0x2bf   : > { %995 = dma.vmem_to_hbm [thread:$0]  (%p1142_p0), %s2134_s9, %s2121_s10, %s2132_s14, %s968_s12, %s1695_s28, %s1695_s28, %s1696_s30  }
 0x2c0 PF: > { %s1004_s16 = sand.u32 1, %s1667_s18   ;;  %p2202_p8 = scmp.ne.s32.totalorder %s2192_s6, 0 }
 0x2c1   : > { %p2203_p12 = scmp.ge.s32.totalorder %s1679_s21, 2  ;;  %s1005_s23 = scalar_lea.sflag [#allocation4], %s1004_s16 }
 0x2c3   : > { %p1416_p7 = pnand %p2203_p12, %p2202_p8 }
 0x2c5   : > { %p1417_p2 = pneg %p1416_p7 }
 0x2c7   : > { %1662 = dma.done.wait (%p1417_p2), %s1005_s23, 4992  }
 0x2c8   : > { %1664 = vsyncadd (%p1417_p2), %s1005_s23, 4294962304  ;;  %p22_p4 = scmp.ge.s32.totalorder %s1752_s24, 4   ;;  %s2204_s18 = smov %s1671_s19 }
 0x2c9   : > { %s2205_s19 = smov %s1675_s20  ;;  %s2206_s20 = smov %s1764_s27 }
 0x2ca   : > { %s2207_s21 = smov %s1752_s24  ;;  %24 = sbr.rel (!%p22_p4) target bundleno = 10 (0xa), region = 110 }
 0x2cf   :  { %1010 = vsyncpa [#allocation3], 1 }
 0x2d0   :  { %1012 = vsyncpa [#allocation3 + $0x1], 1 }
 0x2d1   :  { %1013 = vsyncpa [#allocation6], 1 }
 0x2d2   :  { %1015 = vsyncpa [#allocation6 + $0x1], 1 }
 0x2d3   :  { %1016 = vsyncpa [#allocation9], 1 }
 0x2d4   :  { %1017 = vsyncpa [#allocation4], 1 }
 0x2d5   :  { %1019 = vsyncpa [#allocation4 + $0x1], 1 }

</bundles_post_ra>
